<compile_context>
chip_gen: v5e
topology: v5e:2x2
jax: 0.10.0
libtpu: 0.0.40
codegen_flags: <defaults>
</compile_context>

<pallas_src>
import functools
import math

import jax
import jax.numpy as jnp
from jax import lax
from jax.experimental import pallas as pl
from jax.experimental.pallas import tpu as pltpu

_LN_EPS = 1e-5           # PyTorch nn.LayerNorm default eps
_VMEM_LIMIT = 32 * 1024 * 1024


def _round_up(x, m):
    return ((x + m - 1) // m) * m


# --------------------------------------------------------------------------- #
# Kernel 1: plain linear  y = x @ W^T + b   (used for the fused QKV projection)
# --------------------------------------------------------------------------- #
def _linear_kernel(x_ref, wt_ref, b_ref, o_ref):
    acc = jnp.dot(x_ref[...], wt_ref[...], preferred_element_type=jnp.float32)
    o_ref[...] = (acc + b_ref[...].astype(jnp.float32)).astype(o_ref.dtype)


def _linear(x2d, w, b, *, row_tile):
    M, K = x2d.shape
    N = w.shape[0]
    wt = w.T                      # (K, N)
    br = b.reshape(1, N)
    nbytes = x2d.dtype.itemsize
    cost = pl.CostEstimate(
        flops=2 * M * K * N,
        transcendentals=0,
        bytes_accessed=nbytes * (M * K + K * N + N + M * N),
    )
    return pl.pallas_call(
        _linear_kernel,
        out_shape=jax.ShapeDtypeStruct((M, N), x2d.dtype),
        grid_spec=pltpu.PrefetchScalarGridSpec(
            num_scalar_prefetch=0,
            grid=(M // row_tile,),
            in_specs=[
                pl.BlockSpec((row_tile, K), lambda i: (i, 0)),   # x tile
                pl.BlockSpec((K, N), lambda i: (0, 0)),          # W^T (resident)
                pl.BlockSpec((1, N), lambda i: (0, 0)),          # bias
            ],
            out_specs=pl.BlockSpec((row_tile, N), lambda i: (i, 0)),
        ),
        compiler_params=pltpu.CompilerParams(
            dimension_semantics=("parallel",),
            vmem_limit_bytes=_VMEM_LIMIT,
        ),
        cost_estimate=cost,
    )(x2d, wt, br)


# --------------------------------------------------------------------------- #
# Kernel 2: attention core  softmax(Q K^T / sqrt(d_k)) @ V  (all heads, 1 batch)
# --------------------------------------------------------------------------- #
def _attention_kernel(q_ref, k_ref, v_ref, o_ref, *, scale):
    q = q_ref[0]                                  # (heads, S, D), native dtype
    k = k_ref[0]
    v = v_ref[0]
    s = jnp.einsum("hqd,hkd->hqk", q, k,
                   preferred_element_type=jnp.float32) * scale
    m = jnp.max(s, axis=-1, keepdims=True)
    p = jnp.exp(s - m)
    p = p / jnp.sum(p, axis=-1, keepdims=True)
    o = jnp.einsum("hqk,hkd->hqd", p.astype(v.dtype), v,
                   preferred_element_type=jnp.float32)
    o_ref[0] = o.astype(o_ref.dtype)


def _attention(q4, k4, v4, *, scale):
    B, Hh, S, D = q4.shape
    kern = functools.partial(_attention_kernel, scale=scale)

    def _spec():
        return pl.BlockSpec((1, Hh, S, D), lambda b: (b, 0, 0, 0))

    return pl.pallas_call(
        kern,
        out_shape=jax.ShapeDtypeStruct((B, Hh, S, D), q4.dtype),
        grid_spec=pltpu.PrefetchScalarGridSpec(
            num_scalar_prefetch=0,
            grid=(B,),
            in_specs=[_spec(), _spec(), _spec()],
            out_specs=_spec(),
        ),
        compiler_params=pltpu.CompilerParams(
            dimension_semantics=("parallel",),
            vmem_limit_bytes=_VMEM_LIMIT,
        ),
    )(q4, k4, v4)


# --------------------------------------------------------------------------- #
# Kernel 3: output projection + residual add + LayerNorm1 (fused)
# --------------------------------------------------------------------------- #
def _proj_add_ln_kernel(a_ref, res_ref, wt_ref, b_ref, g_ref, be_ref, o_ref):
    y = jnp.dot(a_ref[...], wt_ref[...], preferred_element_type=jnp.float32)
    y = y + b_ref[...].astype(jnp.float32) + res_ref[...].astype(jnp.float32)
    mu = jnp.mean(y, axis=-1, keepdims=True)
    var = jnp.mean(jnp.square(y - mu), axis=-1, keepdims=True)
    yn = (y - mu) * lax.rsqrt(var + _LN_EPS)
    o_ref[...] = (yn * g_ref[...].astype(jnp.float32)
                  + be_ref[...].astype(jnp.float32)).astype(o_ref.dtype)


def _proj_add_ln(a2d, res2d, w, b, gamma, beta, *, row_tile):
    M, P = a2d.shape
    H = w.shape[0]                # w: (H, P)
    wt = w.T                      # (P, H)
    nbytes = a2d.dtype.itemsize
    cost = pl.CostEstimate(
        flops=2 * M * P * H + 8 * M * H,
        transcendentals=M,
        bytes_accessed=nbytes * (M * P + 2 * M * H + P * H + 3 * H),
    )
    return pl.pallas_call(
        _proj_add_ln_kernel,
        out_shape=jax.ShapeDtypeStruct((M, H), a2d.dtype),
        grid_spec=pltpu.PrefetchScalarGridSpec(
            num_scalar_prefetch=0,
            grid=(M // row_tile,),
            in_specs=[
                pl.BlockSpec((row_tile, P), lambda i: (i, 0)),   # attention out
                pl.BlockSpec((row_tile, H), lambda i: (i, 0)),   # residual input
                pl.BlockSpec((P, H), lambda i: (0, 0)),          # W_o^T
                pl.BlockSpec((1, H), lambda i: (0, 0)),          # b_o
                pl.BlockSpec((1, H), lambda i: (0, 0)),          # LN1 gamma
                pl.BlockSpec((1, H), lambda i: (0, 0)),          # LN1 beta
            ],
            out_specs=pl.BlockSpec((row_tile, H), lambda i: (i, 0)),
        ),
        compiler_params=pltpu.CompilerParams(
            dimension_semantics=("parallel",),
            vmem_limit_bytes=_VMEM_LIMIT,
        ),
        cost_estimate=cost,
    )(a2d, res2d, wt, b.reshape(1, H), gamma.reshape(1, H), beta.reshape(1, H))


# --------------------------------------------------------------------------- #
# Kernel 4: FFN (Linear -> ReLU -> Linear) + residual add + LayerNorm2 (fused)
#           with the FFN hidden dim F tiled as a reduction grid axis.
# --------------------------------------------------------------------------- #
def _ffn_add_ln_kernel(x_ref, w1t_ref, b1_ref, w2t_ref, b2_ref, g_ref, be_ref,
                       o_ref, acc_ref):
    k = pl.program_id(1)

    @pl.when(k == 0)
    def _():
        acc_ref[...] = jnp.zeros_like(acc_ref)

    x = x_ref[...]
    # First matmul + bias + ReLU for this F chunk (ReLU is elementwise over F,
    # so applying it per chunk before the second matmul is exact).
    h = jnp.dot(x, w1t_ref[...], preferred_element_type=jnp.float32)
    h = jnp.maximum(h + b1_ref[...].astype(jnp.float32), 0.0)
    acc_ref[...] += jnp.dot(h.astype(w2t_ref.dtype), w2t_ref[...],
                            preferred_element_type=jnp.float32)

    @pl.when(k == pl.num_programs(1) - 1)
    def _():
        y = acc_ref[...] + b2_ref[...].astype(jnp.float32) + x.astype(jnp.float32)
        mu = jnp.mean(y, axis=-1, keepdims=True)
        var = jnp.mean(jnp.square(y - mu), axis=-1, keepdims=True)
        yn = (y - mu) * lax.rsqrt(var + _LN_EPS)
        o_ref[...] = (yn * g_ref[...].astype(jnp.float32)
                      + be_ref[...].astype(jnp.float32)).astype(o_ref.dtype)


def _ffn_add_ln(x2d, w1, b1, w2, b2, gamma, beta, *, row_tile, f_tile=512):
    M, H = x2d.shape
    F = w1.shape[0]
    tf = min(F, f_tile)
    if F % tf != 0:
        tf = F                    # fall back to full-F residency for odd sizes
    nf = F // tf
    w1t = w1.T                    # (H, F)
    w2t = w2.T                    # (F, H)
    nbytes = x2d.dtype.itemsize
    cost = pl.CostEstimate(
        flops=4 * M * H * F + 8 * M * H,
        transcendentals=M,
        bytes_accessed=nbytes * (2 * M * H + 2 * H * F + F + 3 * H),
    )
    return pl.pallas_call(
        _ffn_add_ln_kernel,
        out_shape=jax.ShapeDtypeStruct((M, H), x2d.dtype),
        grid_spec=pltpu.PrefetchScalarGridSpec(
            num_scalar_prefetch=0,
            grid=(M // row_tile, nf),
            in_specs=[
                pl.BlockSpec((row_tile, H), lambda i, k: (i, 0)),  # x (+residual)
                pl.BlockSpec((H, tf), lambda i, k: (0, k)),        # W1^T chunk
                pl.BlockSpec((1, tf), lambda i, k: (0, k)),        # b1 chunk
                pl.BlockSpec((tf, H), lambda i, k: (k, 0)),        # W2^T chunk
                pl.BlockSpec((1, H), lambda i, k: (0, 0)),         # b2
                pl.BlockSpec((1, H), lambda i, k: (0, 0)),         # LN2 gamma
                pl.BlockSpec((1, H), lambda i, k: (0, 0)),         # LN2 beta
            ],
            out_specs=pl.BlockSpec((row_tile, H), lambda i, k: (i, 0)),
            scratch_shapes=[pltpu.VMEM((row_tile, H), jnp.float32)],
        ),
        compiler_params=pltpu.CompilerParams(
            dimension_semantics=("parallel", "arbitrary"),
            vmem_limit_bytes=_VMEM_LIMIT,
        ),
        cost_estimate=cost,
    )(x2d, w1t, b1.reshape(1, F), w2t, b2.reshape(1, H),
      gamma.reshape(1, H), beta.reshape(1, H))


# --------------------------------------------------------------------------- #
# Full encoder layer wrapper (reshape / pad glue stays in plain JAX).
# --------------------------------------------------------------------------- #
def transformer_encoder_layer_pallas(x, params):
    """x: (batch, seq, num_hidden)."""
    B, S, H = x.shape
    heads = params["num_heads"]
    d_k = params["d_k"]
    M = B * S
    P = heads * H

    row_tile = min(256, _round_up(M, 8))
    M_pad = _round_up(M, row_tile)

    x2d = x.reshape(M, H)
    x2d_p = jnp.pad(x2d, ((0, M_pad - M), (0, 0))) if M_pad != M else x2d

    # ---- Multi-head attention -------------------------------------------- #
    # Fused QKV projection: one GEMM with a lane-dense (3 * heads * H) output.
    wqkv = jnp.concatenate([params["wq"], params["wk"], params["wv"]], axis=0)
    bqkv = jnp.concatenate([params["bq"], params["bk"], params["bv"]], axis=0)
    qkv = _linear(x2d_p, wqkv, bqkv, row_tile=row_tile)[:M]      # (M, 3P)

    q, k, v = qkv[:, :P], qkv[:, P:2 * P], qkv[:, 2 * P:]
    # Replicates the module's raw `.view(-1, heads, seq, hidden)` reshape.
    q4 = q.reshape(B, heads, S, H)
    k4 = k.reshape(B, heads, S, H)
    v4 = v.reshape(B, heads, S, H)

    attn = _attention(q4, k4, v4, scale=1.0 / math.sqrt(d_k))    # (B, heads, S, H)
    # TODO(synk): attention dropout (p=0.1) is identity in eval/inference mode;
    # the causal mask path is unused because forward() is called with mask=None.

    attn2d = attn.transpose(0, 2, 1, 3).reshape(M, P)
    attn2d_p = (jnp.pad(attn2d, ((0, M_pad - M), (0, 0)))
                if M_pad != M else attn2d)

    # ---- W_o projection + residual + LayerNorm1 (fused kernel) ------------ #
    x_ln1 = _proj_add_ln(attn2d_p, x2d_p, params["wo"], params["bo"],
                         params["ln1_g"], params["ln1_b"], row_tile=row_tile)

    # ---- FeedForward + residual + LayerNorm2 (fused, F-tiled kernel) ------ #
    out = _ffn_add_ln(x_ln1, params["w1"], params["b1"], params["w2"],
                      params["b2"], params["ln2_g"], params["ln2_b"],
                      row_tile=row_tile)

    return out[:M].reshape(B, S, H)


# --------------------------------------------------------------------------- #
# Parameter init (mimics nn.Linear / nn.LayerNorm defaults) and pure-JAX ref.
# --------------------------------------------------------------------------- #
def _init_params(key, num_hidden, num_heads, num_ffn_hidden):
    keys = jax.random.split(key, 12)

    def linear_init(kw, kb, out_dim, in_dim):
        lim = 1.0 / math.sqrt(in_dim)
        w = jax.random.uniform(kw, (out_dim, in_dim), jnp.float32, -lim, lim)
        b = jax.random.uniform(kb, (out_dim,), jnp.float32, -lim, lim)
        return w, b

    P = num_heads * num_hidden
    wq, bq = linear_init(keys[0], keys[1], P, num_hidden)
    wk, bk = linear_init(keys[2], keys[3], P, num_hidden)
    wv, bv = linear_init(keys[4], keys[5], P, num_hidden)
    wo, bo = linear_init(keys[6], keys[7], num_hidden, P)
    w1, b1 = linear_init(keys[8], keys[9], num_ffn_hidden, num_hidden)
    w2, b2 = linear_init(keys[10], keys[11], num_hidden, num_ffn_hidden)
    ones = jnp.ones((num_hidden,), jnp.float32)
    zeros = jnp.zeros((num_hidden,), jnp.float32)
    return dict(num_heads=num_heads, d_k=1,
                wq=wq, bq=bq, wk=wk, bk=bk, wv=wv, bv=bv, wo=wo, bo=bo,
                w1=w1, b1=b1, w2=w2, b2=b2,
                ln1_g=ones, ln1_b=zeros, ln2_g=ones, ln2_b=zeros)


def _reference(x, params):
    B, S, H = x.shape
    heads = params["num_heads"]
    P = heads * H
    hi = lax.Precision.HIGHEST

    def lin(z, w, b):
        return jnp.dot(z, w.T, precision=hi) + b

    def layer_norm(z, g, b):
        mu = jnp.mean(z, axis=-1, keepdims=True)
        var = jnp.mean(jnp.square(z - mu), axis=-1, keepdims=True)
        return (z - mu) * lax.rsqrt(var + _LN_EPS) * g + b

    q = lin(x, params["wq"], params["bq"]).reshape(B, heads, S, H)
    k = lin(x, params["wk"], params["bk"]).reshape(B, heads, S, H)
    v = lin(x, params["wv"], params["bv"]).reshape(B, heads, S, H)
    s = jnp.einsum("bhqd,bhkd->bhqk", q, k,
                   precision=hi) / math.sqrt(params["d_k"])
    a = jax.nn.softmax(s, axis=-1)
    o = jnp.einsum("bhqk,bhkd->bhqd", a, v, precision=hi)
    o = o.transpose(0, 2, 1, 3).reshape(B, S, P)
    o = lin(o, params["wo"], params["bo"])
    x1 = layer_norm(o + x, params["ln1_g"], params["ln1_b"])
    ff = lin(jnp.maximum(lin(x1, params["w1"], params["b1"]), 0.0),
             params["w2"], params["b2"])
    return layer_norm(x1 + ff, params["ln2_g"], params["ln2_b"])


if __name__ == "__main__":
    num_hidden = 32
    num_heads = 4
    seq_len = 8
    batch = 2

    key = jax.random.PRNGKey(0)
    kx, kp = jax.random.split(key)
    x = jax.random.normal(kx, (batch, seq_len, num_hidden), jnp.float32)
    params = _init_params(kp, num_hidden, num_heads, 2 * num_hidden)

    out = transformer_encoder_layer_pallas(x, params)
    out = jax.block_until_ready(out)

    ref = _reference(x, params)
    assert out.shape == x.shape
    # Tolerance covers MXU f32 (multi-pass) vs XLA HIGHEST rounding differences;
    # any semantic error (reshape/bias/eps) would be orders of magnitude larger.
    max_err = float(jnp.max(jnp.abs(out - ref)))
    assert jnp.allclose(out, ref, atol=1e-3, rtol=1e-3), max_err

    print("KERNEL_OK")
</pallas_src>

<mosaic_0001>
module attributes {stable_mosaic.version = 11 : i64} {
  func.func @_linear_kernel(%arg0: i32, %arg1: memref<16x32xf32, #tpu.memory_space<vmem>>, %arg2: memref<32x384xf32, #tpu.memory_space<vmem>>, %arg3: memref<1x384xf32, #tpu.memory_space<vmem>>, %arg4: memref<16x384xf32, #tpu.memory_space<vmem>>) attributes {dimension_semantics = [#tpu.dimension_semantics<parallel>], iteration_bounds = array<i64: 1>, scalar_prefetch = 0 : i64, scratch_operands = 0 : i64, tpu.core_type = #tpu.core_type<tc>, window_params = [{transform_indices = @transform_0, window_bounds = array<i64: 16, 32>}, {pipeline_mode = #tpu.pipeline_mode<synchronous>, transform_indices = @transform_1, window_bounds = array<i64: 32, 384>}, {pipeline_mode = #tpu.pipeline_mode<synchronous>, transform_indices = @transform_2, window_bounds = array<i64: 1, 384>}, {transform_indices = @transform_3, window_bounds = array<i64: 16, 384>}]} {
    %c0 = arith.constant 0 : index
    %c0_0 = arith.constant 0 : index
    %0 = vector.load %arg1[%c0, %c0_0] : memref<16x32xf32, #tpu.memory_space<vmem>>, vector<16x32xf32>
    %c0_1 = arith.constant 0 : index
    %c0_2 = arith.constant 0 : index
    %1 = vector.load %arg2[%c0_1, %c0_2] : memref<32x384xf32, #tpu.memory_space<vmem>>, vector<32x384xf32>
    %cst = arith.constant dense<0.000000e+00> : vector<16x384xf32>
    %2 = tpu.matmul %0, %1, %cst {dimension_numbers = #tpu.dot_dimension_numbers<[1], [0], [0], [1], [0, 0, 1, 1], [], []>} : vector<16x32xf32>, vector<32x384xf32>, vector<16x384xf32> -> vector<16x384xf32>
    %c0_3 = arith.constant 0 : index
    %c0_4 = arith.constant 0 : index
    %3 = vector.load %arg3[%c0_3, %c0_4] : memref<1x384xf32, #tpu.memory_space<vmem>>, vector<1x384xf32>
    %4 = vector.broadcast %3 : vector<1x384xf32> to vector<16x384xf32>
    %5 = arith.addf %2, %4 : vector<16x384xf32>
    %c0_5 = arith.constant 0 : index
    %c0_6 = arith.constant 0 : index
    %6 = vector.load %arg4[%c0_5, %c0_6] : memref<16x384xf32, #tpu.memory_space<vmem>>, vector<16x384xf32>
    tpu.vector_store %arg4[%c0_5, %c0_6], %5 {strides = array<i32>} : memref<16x384xf32, #tpu.memory_space<vmem>>, vector<16x384xf32>,
    return
  }
  func.func @transform_0(%arg0: i32) -> (i32, i32) {
    %c0_i32 = arith.constant 0 : i32
    %c0_i32_0 = arith.constant 0 : i32
    return %arg0, %c0_i32 : i32, i32
  }
  func.func @transform_1(%arg0: i32) -> (i32, i32) {
    %c0_i32 = arith.constant 0 : i32
    %c0_i32_0 = arith.constant 0 : i32
    %c0_i32_1 = arith.constant 0 : i32
    return %c0_i32, %c0_i32_0 : i32, i32
  }
  func.func @transform_2(%arg0: i32) -> (i32, i32) {
    %c0_i32 = arith.constant 0 : i32
    %c0_i32_0 = arith.constant 0 : i32
    %c0_i32_1 = arith.constant 0 : i32
    return %c0_i32, %c0_i32_0 : i32, i32
  }
  func.func @transform_3(%arg0: i32) -> (i32, i32) {
    %c0_i32 = arith.constant 0 : i32
    %c0_i32_0 = arith.constant 0 : i32
    return %arg0, %c0_i32 : i32, i32
  }
}

</mosaic_0001>

<bundles_post_ra>
// kernel: tpu_custom_call.1
= control target key start
LH: loop header
LB: loop body
LE: loop exit
PB: predicated region body
PF: predicated region fallthrough
CT: control target
= control target key end

     0   :  { %8 = vsyncpa [#allocation3], 0  ;;  %s356_s0 = inlined_call_operand.hbm [shape: f32[16,32], index: 0, kind: input, shape index: {}]   ;;  %s357_s1 = inlined_call_operand.hbm [shape: f32[32,384], index: 1, kind: input, shape index: {}]   ;;  %s358_s2 = inlined_call_operand.hbm [shape: f32[1,384], index: 2, kind: input, shape index: {}]   ;;  %s359_s3 = inlined_call_operand.hbm [shape: f32[16,384], index: 3, kind: output, shape index: {}]  }
   0x1   :  { %9 = vsyncpa [#allocation6], 0  ;;  %s28_s14 = sshll.u32 %s357_s1, 4  ;;  %s29_s14 = int_to_ptr.hbm [resolvable:$true] %s28_s14 }
   0x2   :  { %10 = vsyncpa [#allocation4], 0  ;;  %s304_s15 = smov [#allocation5]   ;;  %s15_s19 = sshll.u32 %s356_s0, 4  ;;  %s16_s19 = int_to_ptr.hbm [resolvable:$true] %s15_s19 }
   0x3   :  { %s30_s16 = sshll.u32 %s304_s15, 4  ;;  %s305_s20 = smov 384   ;;  %s31_s16 = int_to_ptr.vmem [resolvable:$true] %s30_s16 }
   0x4   :  { %s306_s21 = smov 24   ;;  %s307_s22 = smov [#allocation2]  }
   0x5   :  { %36 = dma.hbm_to_vmem [thread:$0]  %s29_s14, 1536, %s31_s16, [#allocation6], %s305_s20, %s305_s20, %s306_s21  }
   0x6   :  { %s17_s23 = sshll.u32 %s307_s22, 4  ;;  %s308_s1 = smov 128   ;;  %s18_s23 = int_to_ptr.vmem [resolvable:$true] %s17_s23 }
   0x7   :  { %s309_s24 = smov 8   ;;  %s42_s27 = sshll.u32 %s358_s2, 4  ;;  %s43_s27 = int_to_ptr.hbm [resolvable:$true] %s42_s27 }
   0x8   :  { %23 = dma.hbm_to_vmem [thread:$0]  %s16_s19, 256, %s18_s23, [#allocation3], %s308_s1, %s308_s1, %s309_s24  }
   0x9   :  { %s310_s28 = smov [#allocation7]  }
   0xa   :  { %s44_s0 = sshll.u32 %s310_s28, 4  ;;  %s45_s0 = int_to_ptr.vmem [resolvable:$true] %s44_s0 }
   0xb   :  { %47 = dma.hbm_to_vmem [thread:$0]  %s43_s27, 48, %s45_s0, [#allocation6]  }
   0xc   :  { %298 = dma.done.wait [#allocation3], 256  }
   0xd   :  { %299 = vsyncadd [#allocation3], 4294967040 }
   0xe   :  { %300 = dma.done.wait [#allocation6], 1584  }
   0xf   :  { %301 = vsyncadd [#allocation6], 4294965712  ;;  %v73_v0 = vld [vmem:[#allocation5 + $0x58] sm:$0xff]  ;;  %v70_v1 = vld [vmem:[#allocation5 + $0x40] sm:$0xff]  ;;  %vm82_vm0 = vcmask 261120   ;;  %s311_s2 = smov [#allocation8]  }
  0x10   :  { %147 = vmatpush.msra.mxu2 %v73_v0  ;;  %v67_v2 = vld [vmem:[#allocation5 + $0x28] sm:$0xff]  ;;  %v72_v3 = vld [vmem:[#allocation5 + $0x50] sm:$0xff]  ;;  %v69_v5 = vld [vmem:[#allocation5 + $0x38] sm:$0xff]  ;;  %s168_s29 = sshll.u32 %s311_s2, 4  ;;  %s170_s5 = sshll.u32 %s359_s3, 4  ;;  %s169_s29 = int_to_ptr.vmem [resolvable:$true] %s168_s29  ;;  %s171_s5 = int_to_ptr.hbm [resolvable:$true] %s170_s5 }
  0x11   :  { %124 = vmatpush.msra.mxu1 %v72_v3  ;;  %v71_v4 = vld [vmem:[#allocation5 + $0x48] sm:$0xff]  ;;  %v68_v6 = vld [vmem:[#allocation5 + $0x30] sm:$0xff]  ;;  %v66_v7 = vld [vmem:[#allocation5 + $0x20] sm:$0xff] }
  0x12   :  { %148 = vmatpush.msra.mxu2 %v70_v1  ;;  %190 = vmatpush.msra.mxu3 %v71_v4  ;;  %v64_v8 = vld [vmem:[#allocation5 + $0x10] sm:$0xff]  ;;  %v65_v9 = vld [vmem:[#allocation5 + $0x18] sm:$0xff]  ;;  %v63_v11 = vld [vmem:[#allocation5 + $0x8] sm:$0xff] }
  0x13   :  { %125 = vmatpush.msra.mxu1 %v69_v5  ;;  %101 = vmatpush.msra.mxu0 %v71_v4  ;;  %v60_v10 = vld [vmem:[#allocation2] sm:$0xff]  ;;  %v62_v12 = vld [vmem:[#allocation5] sm:$0xff]  ;;  %v61_v13 = vld [vmem:[#allocation2 + $0x8] sm:$0xff] }
  0x14   :  { %149 = vmatpush.msra.mxu2 %v67_v2  ;;  %191 = vmatpush.msra.mxu3 %v68_v6  ;;  %v74_v14 = vld [vmem:[#allocation7] sm:$0x7] }
  0x15   :  { %126 = vmatpush.msra.mxu1 %v66_v7  ;;  %102 = vmatpush.msra.mxu0 %v68_v6  ;;  %v77_v15 = vperm.slane %v74_v14, 1  ;;  %v76_v18 = vperm.slane %v74_v14, 0  ;;  %v78_v19 = vperm.slane %v74_v14, 2 }
  0x16   :  { %150 = vmatpush.msra.mxu2 %v64_v8  ;;  %192 = vmatpush.msra.mxu3 %v65_v9 }
  0x17   :  { %188 = vmatmul.msk.f32.vlgmr.msra.gmra.mxu2 %vm82_vm0, %v60_v10  ;;  %127 = vmatpush.msra.mxu1 %v63_v11 }
  0x18   :  { %186 = vmatmul.msk.f32.vlgmr.msra.gmra.mxu1 %vm82_vm0, %v60_v10  ;;  %193 = vmatpush.msra.mxu3 %v62_v12 }
  0x19   :  { %185 = vmatmul.msk.f32.vlgmr.msra.gmra.mxu3 %vm82_vm0, %v61_v13  ;;  %103 = vmatpush.msra.mxu0 %v65_v9 }
  0x1b   :  { %104 = vmatpush.msra.mxu0 %v62_v12 }
  0x1c   :  { %184 = vmatmul.msk.f32.vlgmr.msra.gmra.mxu0 %vm82_vm0, %v60_v10 }
  0x1f   :  { %189 = vmatmul.msk.f32.gmra.mxu2 %vm82_vm0, %v61_v13 }
  0x20   :  { %187 = vmatmul.msk.f32.gmra.mxu1 %vm82_vm0, %v61_v13 }
  0x95   :  { %v129_v16 = vpop.f32.mrf.mxu1 }
  0x96   :  { %v130_v17 = vadd.f32 %v129_v16, %v77_v15 }
  0x98   :  { %159 = vst [vmem:[#allocation8 + $0x8] sm:$0xff] %v130_v17 }
  0x99   :  { %v106_v20 = vpop.f32.mrf.mxu0 }
  0x9a   :  { %v152_v21 = vpop.f32.mrf.mxu2  ;;  %v107_v22 = vadd.f32 %v106_v20, %v76_v18 }
  0x9b   :  { %v153_v23 = vadd.f32 %v152_v21, %v78_v19 }
  0x9c   :  { %158 = vst [vmem:[#allocation8] sm:$0xff] %v107_v22  ;;  %v109_v24 = vpop.f32.mrf.mxu3 }
  0x9d   :  { %160 = vst [vmem:[#allocation8 + $0x10] sm:$0xff] %v153_v23  ;;  %v110_v25 = vadd.f32 %v109_v24, %v76_v18  ;;  %v132_v26 = vpop.f32.mrf.mxu1 }
  0x9e   :  { %v133_v27 = vadd.f32 %v132_v26, %v77_v15 }
  0x9f   :  { %161 = vst [vmem:[#allocation8 + $0x18] sm:$0xff] %v110_v25 }
  0xa0   :  { %162 = vst [vmem:[#allocation8 + $0x20] sm:$0xff] %v133_v27 }
  0xa2   :  { %v155_v28 = vpop.f32.mrf.mxu2 }
  0xa3   :  { %v156_v29 = vadd.f32 %v155_v28, %v78_v19 }
  0xa5   :  { %163 = vst [vmem:[#allocation8 + $0x28] sm:$0xff] %v156_v29 }
  0xa6   :  { %176 = dma.vmem_to_hbm [thread:$0]  %s169_s29, 768, %s171_s5, [#allocation4], %s305_s20, %s305_s20, %s306_s21  }
  0xa7   :  { %302 = dma.done.wait [#allocation4], 768  }
  0xa8   :  { %303 = vsyncadd [#allocation4], 4294966528 }
  0xa9   :  { %181 = vsyncpa [#allocation3], 1 }
  0xaa   :  { %182 = vsyncpa [#allocation6], 1 }
  0xab   :  { %183 = vsyncpa [#allocation4], 1 }

</bundles_post_ra>
